<compile_context>
chip_gen: v6e
topology: v6e:2x2x1
jax: 0.10.0
libtpu: 0.0.40
codegen_flags: <defaults>
</compile_context>

<pallas_src>
import functools
import math

import jax
import jax.numpy as jnp
from jax import lax
from jax.experimental import pallas as pl
from jax.experimental.pallas import tpu as pltpu


# ---------------------------------------------------------------------------
# Helpers
# ---------------------------------------------------------------------------
def _vmem_budget_bytes():
    """Scoped-VMEM budget: ~3/4 of physical, capped at 96 MiB, floor 32 MiB."""
    cap = 0
    try:
        info = pltpu.get_tpu_info()
        cap = int(getattr(info, "vmem_capacity_bytes", 0) or 0)
    except Exception:
        cap = 0
    if cap <= 0:
        return 48 * 1024 * 1024          # safe on every generation (v7x = 64 MiB)
    return max(32 * 1024 * 1024, min(96 * 1024 * 1024, (cap * 3) // 4))


def _pick_tile(n, candidates):
    """Preferred tile <= n; prefer exact divisors of n (no padding needed)."""
    cands = [c for c in candidates if c <= n]
    if not cands:
        return n
    for c in cands:
        if n % c == 0:
            return c
    return cands[0]                      # caller pads n up to a multiple


# ---------------------------------------------------------------------------
# Kernel 0: fused two-branch MLP.  x_cat = relu(f @ [w_p0|w_n0]) @ blkdiag(w1)
# ---------------------------------------------------------------------------
def _mlp_kernel(feat_ref, w0_ref, w1_ref, x_ref):
    h = jnp.maximum(
        jnp.dot(feat_ref[...], w0_ref[...], preferred_element_type=jnp.float32),
        0.0)
    # TODO(synk): dropout would be applied here in train mode (identity in eval).
    x_ref[...] = jnp.dot(h, w1_ref[...], preferred_element_type=jnp.float32)


# ---------------------------------------------------------------------------
# Kernel 1: hop-1.  Y = [A_p@x_p | A_n@x_n | A_p@x_n]   (3H wide, row+K tiled)
# ---------------------------------------------------------------------------
def _hop1_kernel(ap_ref, an_ref, x_ref, y_ref, accp_ref, accn_ref,
                 *, h, tk, x_step):
    k = pl.program_id(1)

    @pl.when(k == 0)
    def _():
        accp_ref[...] = jnp.zeros_like(accp_ref)
        accn_ref[...] = jnp.zeros_like(accn_ref)

    if x_step:                                   # RHS is VMEM-resident: slice rows
        off = pl.multiple_of(k * x_step, x_step)
    else:                                        # RHS streamed per K tile
        off = 0
    x = x_ref[pl.ds(off, tk), :].astype(ap_ref.dtype)

    accp_ref[...] += jnp.dot(ap_ref[...], x, preferred_element_type=jnp.float32)
    accn_ref[...] += jnp.dot(an_ref[...], x[:, h:],
                             preferred_element_type=jnp.float32)

    @pl.when(k == pl.num_programs(1) - 1)
    def _():
        # Direct slice stores (no concatenate temp); finalize only.
        y_ref[:, :h] = accp_ref[:, :h]           # A_p @ x_p
        y_ref[:, h:2 * h] = accn_ref[...]        # A_n @ x_n
        y_ref[:, 2 * h:] = accp_ref[:, h:]       # A_p @ x_n


# ---------------------------------------------------------------------------
# Kernel 2: hop-2 + CONVOL combine + L2 normalize.
#   Zp = A_p @ Y[:, :2H]   -> [A_p A_p x_p | A_p A_n x_n]
#   Zn = A_n @ Y[:, 2H:3H] ->  A_n A_p x_n
#   z  = Zp*s_a + Y_row[:, :2H]*s_y + x_row*s_x + Zn @ S_n
# ---------------------------------------------------------------------------
def _hop2_kernel(ap_ref, an_ref, ystr_ref, yrow_ref, xrow_ref,
                 s_a_ref, s_y_ref, s_x_ref, s_n_ref,
                 z_ref, znorm_ref, accp_ref, accn_ref,
                 *, h, tk, y_step):
    k = pl.program_id(1)

    @pl.when(k == 0)
    def _():
        accp_ref[...] = jnp.zeros_like(accp_ref)
        accn_ref[...] = jnp.zeros_like(accn_ref)

    if y_step:
        off = pl.multiple_of(k * y_step, y_step)
    else:
        off = 0
    y = ystr_ref[pl.ds(off, tk), :].astype(ap_ref.dtype)

    accp_ref[...] += jnp.dot(ap_ref[...], y[:, :2 * h],
                             preferred_element_type=jnp.float32)
    accn_ref[...] += jnp.dot(an_ref[...], y[:, 2 * h:],
                             preferred_element_type=jnp.float32)

    @pl.when(k == pl.num_programs(1) - 1)
    def _():
        feat = (accp_ref[...] * s_a_ref[...]               # [wp2*ApApxp | wn2*ApAnxn]
                + yrow_ref[:, :2 * h] * s_y_ref[...]       # [wp1*Apxp   | wn0*Anxn  ]
                + xrow_ref[...] * s_x_ref[...]             # [wp0*xp     | 0         ]
                + jnp.dot(accn_ref[...], s_n_ref[...],     # [0          | wn1*AnApxn]
                          preferred_element_type=jnp.float32))
        z_ref[...] = feat
        # F.normalize(z, p=2, dim=1, eps=1e-12) via a single EUP rsqrt.
        sq = jnp.sum(feat * feat, axis=1, keepdims=True)
        znorm_ref[...] = feat * lax.rsqrt(jnp.maximum(sq, 1e-24))


# ---------------------------------------------------------------------------
# Wrapper
# ---------------------------------------------------------------------------
def dsgc_forward(A_p, A_n, features, params, *,
                 a_dtype=jnp.bfloat16, tm=None, tk=None, rhs_resident=None):
    """Fused DSGC forward (undirected graph).

    Returns (z, z_p, z_n, F.normalize(z), predictions_cluster, prob)."""
    f32 = jnp.float32
    N, F = features.shape
    H = params["w_p1"].shape[1]
    H2, H3 = 2 * H, 3 * H

    a_dtype = jnp.dtype(a_dtype)
    ait = a_dtype.itemsize

    # ---- tiles (prefer divisors of N; otherwise pad N up to a multiple) ----
    tm = int(tm) if tm else _pick_tile(N, (256, 512, 128, 64, 32, 16, 8))
    tk_cands = (2048, 1024, 512, 256, 128) if ait <= 2 else (1024, 512, 256, 128)
    tk = int(tk) if tk else _pick_tile(N, tk_cands)
    base = math.lcm(tm, tk)
    Npad = ((N + base - 1) // base) * base
    if Npad != N:
        pad = Npad - N
        A_p = jnp.pad(A_p, ((0, pad), (0, pad)))
        A_n = jnp.pad(A_n, ((0, pad), (0, pad)))
        features = jnp.pad(features, ((0, pad), (0, 0)))
    grid_rows, grid_k = Npad // tm, Npad // tk
    # NOTE: on v7x (2 TensorCores) an even grid_rows keeps both cores busy.

    vmem_budget = _vmem_budget_bytes()

    def _fits_resident(width):
        a_tiles = 2 * 2 * tm * tk * ait          # two A streams, double-buffered
        rhs = Npad * width * 4                   # f32 resident RHS
        return a_tiles + 2 * rhs + (8 << 20) <= vmem_budget

    x_res = _fits_resident(H2) if rhs_resident is None else bool(rhs_resident)
    y_res = _fits_resident(H3) if rhs_resident is None else bool(rhs_resident)

    # ---- fused MLP weights: [w_p0 | w_n0] and blockdiag(w_p1, w_n1) ----
    w0_cat = jnp.concatenate([params["w_p0"], params["w_n0"]], axis=1).astype(f32)
    zH = jnp.zeros((H, H), f32)
    w1_blk = jnp.concatenate(
        [jnp.concatenate([params["w_p1"].astype(f32), zH], axis=1),
         jnp.concatenate([zH, params["w_n1"].astype(f32)], axis=1)], axis=0)

    # ---- CONVOL hop-weight coefficient vectors (lane-dense broadcasts) ----
    wp = params["hop_w_p"].reshape(-1).astype(f32)
    wn = params["hop_w_n"].reshape(-1).astype(f32)
    ones = jnp.ones((1, H), f32)
    s_a = jnp.concatenate([wp[2] * ones, wn[2] * ones], axis=1)        # (1, 2H)
    s_y = jnp.concatenate([wp[1] * ones, wn[0] * ones], axis=1)        # (1, 2H)
    s_x = jnp.concatenate([wp[0] * ones, jnp.zeros((1, H), f32)], axis=1)
    s_n = jnp.concatenate([jnp.zeros((H, H), f32),
                           wn[1] * jnp.eye(H, dtype=f32)], axis=1)     # (H, 2H)

    A_p_c = A_p.astype(a_dtype)
    A_n_c = A_n.astype(a_dtype)
    feats = features.astype(f32)

    # ---------------- kernel 0: fused MLP ----------------
    x_cat = pl.pallas_call(
        _mlp_kernel,
        out_shape=jax.ShapeDtypeStruct((Npad, H2), f32),
        grid=(grid_rows,),
        in_specs=[pl.BlockSpec((tm, F), lambda i: (i, 0)),
                  pl.BlockSpec((F, H2), lambda i: (0, 0)),
                  pl.BlockSpec((H2, H2), lambda i: (0, 0))],
        out_specs=pl.BlockSpec((tm, H2), lambda i: (i, 0)),
        compiler_params=pltpu.CompilerParams(
            dimension_semantics=("parallel",),
            vmem_limit_bytes=vmem_budget),
        cost_estimate=pl.CostEstimate(
            flops=int(2 * Npad * F * H2 + 2 * Npad * H2 * H2),
            transcendentals=0,
            bytes_accessed=int(4 * (Npad * F + F * H2 + H2 * H2 + Npad * H2))),
    )(feats, w0_cat, w1_blk)

    # ---------------- kernel 1: hop-1 ----------------
    x_spec = (pl.BlockSpec((Npad, H2), lambda i, k: (0, 0)) if x_res
              else pl.BlockSpec((tk, H2), lambda i, k: (k, 0)))
    y = pl.pallas_call(
        functools.partial(_hop1_kernel, h=H, tk=tk,
                          x_step=(tk if x_res else 0)),
        out_shape=jax.ShapeDtypeStruct((Npad, H3), f32),
        grid=(grid_rows, grid_k),
        in_specs=[pl.BlockSpec((tm, tk), lambda i, k: (i, k)),   # A_p row tile
                  pl.BlockSpec((tm, tk), lambda i, k: (i, k)),   # A_n row tile
                  x_spec],                                       # x_cat RHS
        out_specs=pl.BlockSpec((tm, H3), lambda i, k: (i, 0)),
        scratch_shapes=[pltpu.VMEM((tm, H2), jnp.float32),
                        pltpu.VMEM((tm, H), jnp.float32)],
        compiler_params=pltpu.CompilerParams(
            dimension_semantics=("parallel", "arbitrary"),
            vmem_limit_bytes=vmem_budget),
        cost_estimate=pl.CostEstimate(
            flops=int(2 * Npad * Npad * (H2 + H)),
            transcendentals=0,
            bytes_accessed=int(ait * 2 * Npad * Npad
                               + 4 * Npad * H2 * (1 if x_res else grid_rows)
                               + 4 * Npad * H3)),
    )(A_p_c, A_n_c, x_cat)

    # ---------------- kernel 2: hop-2 + combine + normalize ----------------
    y_spec = (pl.BlockSpec((Npad, H3), lambda i, k: (0, 0)) if y_res
              else pl.BlockSpec((tk, H3), lambda i, k: (k, 0)))
    z, z_norm = pl.pallas_call(
        functools.partial(_hop2_kernel, h=H, tk=tk,
                          y_step=(tk if y_res else 0)),
        out_shape=(jax.ShapeDtypeStruct((Npad, H2), f32),
                   jax.ShapeDtypeStruct((Npad, H2), f32)),
        grid=(grid_rows, grid_k),
        in_specs=[pl.BlockSpec((tm, tk), lambda i, k: (i, k)),   # A_p row tile
                  pl.BlockSpec((tm, tk), lambda i, k: (i, k)),   # A_n row tile
                  y_spec,                                        # Y RHS
                  pl.BlockSpec((tm, H3), lambda i, k: (i, 0)),   # Y row tile
                  pl.BlockSpec((tm, H2), lambda i, k: (i, 0)),   # x_cat row tile
                  pl.BlockSpec((1, H2), lambda i, k: (0, 0)),    # s_a
                  pl.BlockSpec((1, H2), lambda i, k: (0, 0)),    # s_y
                  pl.BlockSpec((1, H2), lambda i, k: (0, 0)),    # s_x
                  pl.BlockSpec((H, H2), lambda i, k: (0, 0))],   # s_n selector
        out_specs=(pl.BlockSpec((tm, H2), lambda i, k: (i, 0)),
                   pl.BlockSpec((tm, H2), lambda i, k: (i, 0))),
        scratch_shapes=[pltpu.VMEM((tm, H2), jnp.float32),
                        pltpu.VMEM((tm, H), jnp.float32)],
        compiler_params=pltpu.CompilerParams(
            dimension_semantics=("parallel", "arbitrary"),
            vmem_limit_bytes=vmem_budget),
        cost_estimate=pl.CostEstimate(
            flops=int(2 * Npad * Npad * (H2 + H) + 8 * Npad * H2),
            transcendentals=int(Npad),
            bytes_accessed=int(ait * 2 * Npad * Npad
                               + 4 * Npad * H3 * (1 if y_res else grid_rows)
                               + 4 * (Npad * H3 + Npad * H2 + 2 * Npad * H2))),
    )(A_p_c, A_n_c, y, y, x_cat, s_a, s_y, s_x, s_n)

    # ---- tiny, lane-sparse head in plain XLA (per perf review) ----
    z = z[:N]
    z_norm = z_norm[:N]
    z_p = z[:, :H]
    z_n = z[:, H:]
    logits = z @ params["W_prob"].astype(f32)
    if params.get("bias") is not None:
        logits = logits + params["bias"].astype(f32)
    pred = jnp.argmax(logits, axis=1)
    prob = jax.nn.softmax(logits, axis=1)
    return z, z_p, z_n, z_norm, pred, prob


# ---------------------------------------------------------------------------
# Reference & test harness
# ---------------------------------------------------------------------------
def _xavier(key, shape, gain=1.414):
    fan_in, fan_out = shape
    bound = gain * jnp.sqrt(6.0 / (fan_in + fan_out))
    return jax.random.uniform(key, shape, jnp.float32, -bound, bound)


def _reference(A_p, A_n, features, p):
    """Pure-JAX reference of the PyTorch forward (eval mode)."""
    x_p = jnp.maximum(features @ p["w_p0"], 0.0) @ p["w_p1"]
    x_n = jnp.maximum(features @ p["w_n0"], 0.0) @ p["w_n1"]
    wp, wn = p["hop_w_p"], p["hop_w_n"]
    feat_p = wp[2] * (A_p @ (A_p @ x_p)) + wp[1] * (A_p @ x_p) + wp[0] * x_p
    feat_n = (wn[2] * (A_p @ (A_n @ x_n)) + wn[1] * (A_n @ (A_p @ x_n))
              + wn[0] * (A_n @ x_n))
    z = jnp.concatenate([feat_p, feat_n], axis=1)
    out = z @ p["W_prob"] + p["bias"]
    pred = jnp.argmax(out, axis=1)
    prob = jax.nn.softmax(out, axis=1)
    znorm = z / jnp.maximum(jnp.linalg.norm(z, axis=1, keepdims=True), 1e-12)
    return z, feat_p, feat_n, znorm, pred, prob, out


def _check_close(outs, ref, tol, label):
    z, z_p, z_n, z_norm, pred, prob = outs
    rz, rzp, rzn, rznorm, rpred, rprob, rlogits = ref
    for name, a, b in (("z", z, rz), ("z_p", z_p, rzp), ("z_n", z_n, rzn),
                       ("z_norm", z_norm, rznorm), ("prob", prob, rprob)):
        assert jnp.allclose(a, b, atol=tol, rtol=tol), f"{label}: {name} mismatch"
    # argmax: allow disagreement only on numerical near-ties.
    row_max = rlogits.max(axis=1)
    chosen = jnp.take_along_axis(rlogits, pred[:, None], axis=1)[:, 0]
    ok = (pred == rpred) | (chosen >= row_max - 1e-3)
    assert bool(jnp.all(ok)), f"{label}: argmax mismatch beyond tie tolerance"


if __name__ == "__main__":
    # Small but grid-exercising shapes (2H = 128 keeps kernel outputs lane-dense).
    N, NFEAT, HIDDEN, NCLASS, HOP = 512, 64, 64, 8, 2

    key = jax.random.PRNGKey(0)
    ks = jax.random.split(key, 10)

    A_p_raw = jax.random.uniform(ks[0], (N, N), jnp.float32)
    A_n_raw = jax.random.uniform(ks[1], (N, N), jnp.float32)
    A_p = A_p_raw / jnp.sum(A_p_raw, axis=1, keepdims=True)
    A_n = A_n_raw / jnp.sum(A_n_raw, axis=1, keepdims=True)
    features = jax.random.normal(ks[2], (N, NFEAT), jnp.float32)

    params = {
        "w_p0": _xavier(ks[3], (NFEAT, HIDDEN)),
        "w_p1": _xavier(ks[4], (HIDDEN, HIDDEN)),
        "w_n0": _xavier(ks[5], (NFEAT, HIDDEN)),
        "w_n1": _xavier(ks[6], (HIDDEN, HIDDEN)),
        "W_prob": _xavier(ks[7], (2 * HIDDEN, NCLASS)),
        "bias": jnp.zeros((NCLASS,), jnp.float32),
        # CONVOL hop weights (module init is all-ones; distinct values here
        # exercise the per-term wiring of the fused combine).
        "hop_w_p": jnp.array([0.7, 1.3, 0.9] + [1.0] * HOP, jnp.float32),        # (hop+3,)
        "hop_w_n": jnp.array([1.1, 0.5, 1.7] + [1.0] * (HOP + 1), jnp.float32),  # (hop+4,)
    }

    ref = _reference(A_p, A_n, features, params)

    # ---- run 1: f32 A, streamed RHS, multi-step K grid -> tight check ----
    outs = dsgc_forward(A_p, A_n, features, params,
                        a_dtype=jnp.float32, tm=128, tk=256, rhs_resident=False)
    outs = jax.block_until_ready(outs)
    _check_close(outs, ref, tol=2e-3, label="f32/streamed")

    # ---- run 2: defaults (bf16 A streaming, resident RHS) -> loose check ----
    outs_bf = dsgc_forward(A_p, A_n, features, params)
    outs_bf = jax.block_until_ready(outs_bf)
    z_bf, rz = outs_bf[0], ref[0]
    assert bool(jnp.all(jnp.isfinite(z_bf))), "bf16 z not finite"
    rel = jnp.linalg.norm(z_bf - rz) / jnp.linalg.norm(rz)
    assert float(rel) < 5e-2, f"bf16 relative error too large: {float(rel)}"

    # ---- run 3: non-divisible N (padding path) + resident RHS, f32 ----
    Ns = 500
    A_p_s, A_n_s, feat_s = A_p[:Ns, :Ns], A_n[:Ns, :Ns], features[:Ns]
    ref_s = _reference(A_p_s, A_n_s, feat_s, params)
    outs_s = dsgc_forward(A_p_s, A_n_s, feat_s, params, a_dtype=jnp.float32)
    outs_s = jax.block_until_ready(outs_s)
    _check_close(outs_s, ref_s, tol=2e-3, label="f32/padded/resident")

    print("KERNEL_OK")
</pallas_src>

<mosaic_0001>
module attributes {stable_mosaic.version = 11 : i64} {
  func.func @_mlp_kernel(%arg0: i32, %arg1: memref<128x64xf32, #tpu.memory_space<vmem>>, %arg2: memref<64x128xf32, #tpu.memory_space<vmem>>, %arg3: memref<128x128xf32, #tpu.memory_space<vmem>>, %arg4: memref<128x128xf32, #tpu.memory_space<vmem>>) attributes {dimension_semantics = [#tpu.dimension_semantics<parallel>], iteration_bounds = array<i64: 4>, scalar_prefetch = 0 : i64, scratch_operands = 0 : i64, tpu.core_type = #tpu.core_type<tc>, window_params = [{transform_indices = @transform_0, window_bounds = array<i64: 128, 64>}, {pipeline_mode = #tpu.pipeline_mode<synchronous>, transform_indices = @transform_1, window_bounds = array<i64: 64, 128>}, {pipeline_mode = #tpu.pipeline_mode<synchronous>, transform_indices = @transform_2, window_bounds = array<i64: 128, 128>}, {transform_indices = @transform_3, window_bounds = array<i64: 128, 128>}]} {
    %c0 = arith.constant 0 : index
    %c0_0 = arith.constant 0 : index
    %0 = vector.load %arg1[%c0, %c0_0] : memref<128x64xf32, #tpu.memory_space<vmem>>, vector<128x64xf32>
    %c0_1 = arith.constant 0 : index
    %c0_2 = arith.constant 0 : index
    %1 = vector.load %arg2[%c0_1, %c0_2] : memref<64x128xf32, #tpu.memory_space<vmem>>, vector<64x128xf32>
    %cst = arith.constant dense<0.000000e+00> : vector<128x128xf32>
    %2 = tpu.matmul %0, %1, %cst {dimension_numbers = #tpu.dot_dimension_numbers<[1], [0], [0], [1], [0, 0, 1, 1], [], []>} : vector<128x64xf32>, vector<64x128xf32>, vector<128x128xf32> -> vector<128x128xf32>
    %cst_3 = arith.constant 0.000000e+00 : f32
    %3 = vector.broadcast %cst_3 : f32 to vector<128x128xf32>
    %4 = arith.maximumf %2, %3 : vector<128x128xf32>
    %c0_4 = arith.constant 0 : index
    %c0_5 = arith.constant 0 : index
    %5 = vector.load %arg3[%c0_4, %c0_5] : memref<128x128xf32, #tpu.memory_space<vmem>>, vector<128x128xf32>
    %cst_6 = arith.constant dense<0.000000e+00> : vector<128x128xf32>
    %6 = tpu.matmul %4, %5, %cst_6 {dimension_numbers = #tpu.dot_dimension_numbers<[1], [0], [0], [1], [0, 0, 1, 1], [], []>} : vector<128x128xf32>, vector<128x128xf32>, vector<128x128xf32> -> vector<128x128xf32>
    %c0_7 = arith.constant 0 : index
    %c0_8 = arith.constant 0 : index
    %7 = vector.load %arg4[%c0_7, %c0_8] : memref<128x128xf32, #tpu.memory_space<vmem>>, vector<128x128xf32>
    tpu.vector_store %arg4[%c0_7, %c0_8], %6 {strides = array<i32>} : memref<128x128xf32, #tpu.memory_space<vmem>>, vector<128x128xf32>,
    return
  }
  func.func @transform_0(%arg0: i32) -> (i32, i32) {
    %c0_i32 = arith.constant 0 : i32
    %c0_i32_0 = arith.constant 0 : i32
    return %arg0, %c0_i32 : i32, i32
  }
  func.func @transform_1(%arg0: i32) -> (i32, i32) {
    %c0_i32 = arith.constant 0 : i32
    %c0_i32_0 = arith.constant 0 : i32
    %c0_i32_1 = arith.constant 0 : i32
    return %c0_i32, %c0_i32_0 : i32, i32
  }
  func.func @transform_2(%arg0: i32) -> (i32, i32) {
    %c0_i32 = arith.constant 0 : i32
    %c0_i32_0 = arith.constant 0 : i32
    %c0_i32_1 = arith.constant 0 : i32
    return %c0_i32, %c0_i32_0 : i32, i32
  }
  func.func @transform_3(%arg0: i32) -> (i32, i32) {
    %c0_i32 = arith.constant 0 : i32
    %c0_i32_0 = arith.constant 0 : i32
    return %arg0, %c0_i32 : i32, i32
  }
}

</mosaic_0001>

<bundles_post_ra>
// kernel: tpu_custom_call.1
= control target key start
LH: loop header
LB: loop body
LE: loop exit
PB: predicated region body
PF: predicated region fallthrough
CT: control target
= control target key end

     0   :  { %8 = vsyncpa [#allocation3], 0  ;;  %s1228_s0 = inlined_call_operand.vmem [shape: f32[512,64], index: 0, kind: input, shape index: {}]   ;;  %s1229_s1 = inlined_call_operand.vmem [shape: f32[64,128], index: 1, kind: input, shape index: {}]   ;;  %s1230_s2 = inlined_call_operand.vmem [shape: f32[128,128], index: 2, kind: input, shape index: {}]   ;;  %s1231_s3 = inlined_call_operand.hbm [shape: f32[512,128], index: 3, kind: output, shape index: {}]  }
   0x1   :  { %10 = vsyncpa [#allocation3 + $0x1], 0  ;;  %s998_s12 = smov 0   ;;  %s1000_s13 = smov 0  }
   0x2   :  { %s1002_s14 = smov 0   ;;  %s1004_s15 = smov 0  }
   0x3 LB: > { %s1019_s16 = sadd.s32 4294967295, %s973_s15   ;;  %s659_s17 = sadd.s32 4294967294, %s973_s15   ;;  %s973_s15 = sphi %s1004_s15, %s1237_s15   ;;  %s969_s14 = sphi %s1002_s14, %s1236_s14   ;;  %s965_s13 = sphi %s1000_s13, %s1235_s13   ;;  %s961_s12 = sphi %s998_s12, %s1234_s12  }
   0x4   : > { %s1023_s18 = sadd.s32 1, %s973_s15   ;;  %s91_s19 = sadd.s32 1, %s969_s14 }
   0x5   : > { %s88_s20 = ssub.s32 %s973_s15, %s1023_s18  ;;  %p101_p0 = scmp.ne.s32.totalorder %s969_s14, %s965_s13 }
   0x6   : > { %p89_p1 = scmp.eq.s32.totalorder %s88_s20, 0  ;;  %p102_p2 = scmp.eq.s32.totalorder %s1019_s16, 3 }
   0x7   : > { %p107_p3 = scmp.ne.s32.totalorder %s965_s13, %s961_s12  ;;  %p108_p4 = scmp.eq.s32.totalorder %s659_s17, 3 }
   0x8   : > { %s1034_s21 = scalar_select %p89_p1, %s969_s14, %s91_s19  }
   0x9   : > { %p1036_p5 = por %p102_p2, %p101_p0  ;;  %p1040_p6 = por %p108_p4, %p107_p3 }
   0xa   : > { %p662_p7 = scmp.ge.s32.totalorder %s973_s15, 1  ;;  %p141_p8 = scmp.lt.s32.totalorder %s973_s15, 5 }
   0xc   : > { %p142_p9 = pnand %p662_p7, %p141_p8 }
   0xd   : > { %s664_s28 = sshll.u32 (!%p142_p9), %s1019_s16, 4  ;;  %s162_s20 = sand.u32 (!%p142_p9), 1, %s965_s13  }
   0xe   : > { %145 = sbr.rel (%p142_p9) target bundleno = 471 (0x1d7), region = 32  ;;  %p166_p10 = scmp.lt.s32.totalorder (!%p142_p9), %s664_s28, 63 }
   0xf   : > { %s663_s25 = sshll.u32 (!%p142_p9), %s162_s20, 7  ;;  %s687_s27 = sshll.u32 (!%p142_p9), %s1019_s16, 11 }
  0x10   : > { %s1159_s26 = scalar_lea.vmem (!%p142_p9), [#allocation2], %s663_s25  ;;  %s1180_s4 = scalar_lea.hbm (!%p142_p9), %s1231_s3, %s687_s27 }
  0x11   : > { %s1188_s5 = scalar_lea.sflag (!%p142_p9), [#allocation3], %s162_s20  ;;  %s975_s6 = smov (!%p142_p9), [#allocation2]  }
  0x12   : > { %s917_s7 = sshll.u32 (!%p142_p9), %s975_s6, 4  ;;  %s918_s7 = int_to_ptr.vmem [resolvable:$false] %s917_s7 }
  0x13   : > { %v195_v0 = vld [vmem:[%s1229_s1 + $0x38] sm:$0xff]  ;;  %v194_v1 = vld [vmem:[%s1229_s1 + $0x30] sm:$0xff]  ;;  %v193_v2 = vld [vmem:[%s1229_s1 + $0x28] sm:$0xff]  ;;  %s1239_s28 = smov (!%p166_p10, %s664_s28), 63  ;;  %vm196_vm0 = vcmask 523264   ;;  %s919_s8 = scalar_lea.vmem %s918_s7, 4096 }
  0x14   : > { %744 = vmatprep.subr.mxu0 %v195_v0  ;;  %v421_v3 = vld [vmem:[%s1230_s2 + $0x78] sm:$0xff]  ;;  %v192_v4 = vld [vmem:[%s1229_s1 + $0x20] sm:$0xff]  ;;  %v420_v5 = vld [vmem:[%s1230_s2 + $0x70] sm:$0xff]  ;;  %s665_s10 = sshll.u32 %s1239_s28, 3  ;;  %s597_s28 = sshll.u32 %s1159_s26, 4  ;;  %s1182_s28 = int_to_ptr.vmem [resolvable:$true] %s597_s28 }
  0x15   : > { %745 = vmatpush3.msra.mxu0 %v195_v0  ;;  %840 = vmatprep.subr.mxu1 %v421_v3  ;;  %v191_v6 = vld [vmem:[%s1229_s1 + $0x18] sm:$0xff]  ;;  %s1071_s24 = scalar_lea.vmem %s1228_s0, %s665_s10  ;;  %v419_v7 = vld [vmem:[%s1230_s2 + $0x68] sm:$0xff]  ;;  %v190_v9 = vld [vmem:[%s1229_s1 + $0x10] sm:$0xff]  ;;  %s913_s16 = scalar_lea.vmem %s1182_s28, 2048 }
  0x16   : > { %746 = vmatprep.subr.mxu0 %v194_v1  ;;  %856 = vmatpush3.msra.mxu1 %v421_v3  ;;  %v172_v8 = vld [vmem:[%s1071_s24] sm:$0xff]  ;;  %v189_v11 = vld [vmem:[%s1229_s1 + $0x8] sm:$0xff]  ;;  %v417_v12 = vld [vmem:[%s1230_s2 + $0x58] sm:$0xff]  ;;  %p914_p11 = scmp.ne.s32.totalorder %s1182_s28, %s913_s16  ;;  %p920_p0 = scmp.lt.s32.totalorder %s1182_s28, %s918_s7 }
  0x17   : > { %747 = vmatpush3.msra.mxu0 %v194_v1  ;;  %841 = vmatprep.subr.mxu1 %v420_v5  ;;  %v418_v10 = vld [vmem:[%s1230_s2 + $0x60] sm:$0xff]  ;;  %v416_v14 = vld [vmem:[%s1230_s2 + $0x50] sm:$0xff]  ;;  %v173_v15 = vld [vmem:[%s1071_s24 + $0x8] sm:$0xff]  ;;  %p921_p1 = scmp.lt.s32.totalorder %s919_s8, %s913_s16 }
  0x18   : > { %748 = vmatprep.subr.mxu0 %v193_v2  ;;  %857 = vmatpush3.msra.mxu1 %v420_v5  ;;  %v188_v13 = vld [vmem:[%s1229_s1] sm:$0xff]  ;;  %v174_v16 = vld [vmem:[%s1071_s24 + $0x10] sm:$0xff]  ;;  %v415_v17 = vld [vmem:[%s1230_s2 + $0x48] sm:$0xff]  ;;  %p915_p12 = pnand %p914_p11, %p1036_p5 }
  0x19   : > { %749 = vmatpush3.msra.mxu0 %v193_v2  ;;  %842 = vmatprep.subr.mxu1 %v419_v7  ;;  %v175_v18 = vld [vmem:[%s1071_s24 + $0x18] sm:$0xff]  ;;  %v176_v19 = vld [vmem:[%s1071_s24 + $0x20] sm:$0xff]  ;;  %v177_v21 = vld [vmem:[%s1071_s24 + $0x28] sm:$0xff]  ;;  %p922_p2 = por %p921_p1, %p920_p0 }
  0x1a   : > { %750 = vmatprep.subr.mxu0 %v192_v4  ;;  %760 = vmatprep.mubr.msk.f32.mxu0 %vm196_vm0, %v172_v8  ;;  %v414_v20 = vld [vmem:[%s1230_s2 + $0x40] sm:$0xff]  ;;  %v178_v22 = vld [vmem:[%s1071_s24 + $0x30] sm:$0xff]  ;;  %v413_v23 = vld [vmem:[%s1230_s2 + $0x38] sm:$0xff]  ;;  %p916_p13 = pneg %p915_p12 }
  0x1b   : > { %751 = vmatpush3.msra.mxu0 %v192_v4  ;;  %858 = vmatpush3.msra.mxu1 %v419_v7  ;;  %v179_v24 = vld [vmem:[%s1071_s24 + $0x38] sm:$0xff]  ;;  %v180_v25 = vld [vmem:[%s1071_s24 + $0x40] sm:$0xff]  ;;  %v412_v26 = vld [vmem:[%s1230_s2 + $0x30] sm:$0xff] }
  0x1c   : > { %752 = vmatprep.subr.mxu0 %v191_v6  ;;  %843 = vmatprep.subr.mxu1 %v418_v10  ;;  %v181_v27 = vld [vmem:[%s1071_s24 + $0x48] sm:$0xff]  ;;  %v182_v28 = vld [vmem:[%s1071_s24 + $0x50] sm:$0xff]  ;;  %v183_v30 = vld [vmem:[%s1071_s24 + $0x58] sm:$0xff]  ;;  %p923_p3 = pnand %p922_p2, %p916_p13 }
  0x1d   : > { %753 = vmatpush3.msra.mxu0 %v191_v6  ;;  %859 = vmatpush3.msra.mxu1 %v418_v10  ;;  %v411_v29 = vld [vmem:[%s1230_s2 + $0x28] sm:$0xff]  ;;  %v184_v31 = vld [vmem:[%s1071_s24 + $0x60] sm:$0xff]  ;;  %v409_v34 = vld [vmem:[%s1230_s2 + $0x18] sm:$0xff] }
  0x1e   : > { %754 = vmatprep.subr.mxu0 %v190_v9  ;;  %844 = vmatprep.subr.mxu1 %v417_v12  ;;  %v410_v32 = vld [vmem:[%s1230_s2 + $0x20] sm:$0xff]  ;;  %v185_v33 = vld [vmem:[%s1071_s24 + $0x68] sm:$0xff]  ;;  %v186_v35 = vld [vmem:[%s1071_s24 + $0x70] sm:$0xff] }
  0x1f   : > { %755 = vmatpush3.msra.mxu0 %v190_v9  ;;  %860 = vmatpush3.msra.mxu1 %v417_v12  ;;  %v187_v36 = vld [vmem:[%s1071_s24 + $0x78] sm:$0xff]  ;;  %v408_v37 = vld [vmem:[%s1230_s2 + $0x10] sm:$0xff]  ;;  %v407_v38 = vld [vmem:[%s1230_s2 + $0x8] sm:$0xff] }
  0x20   : > { %756 = vmatprep.subr.mxu0 %v189_v11  ;;  %845 = vmatprep.subr.mxu1 %v416_v14  ;;  %v406_v39 = vld [vmem:[%s1230_s2] sm:$0xff] }
  0x21   : > { %757 = vmatpush3.msra.mxu0 %v189_v11  ;;  %861 = vmatpush3.msra.mxu1 %v416_v14 }
  0x22   : > { %758 = vmatprep.subr.mxu0 %v188_v13  ;;  %846 = vmatprep.subr.mxu1 %v415_v17 }
  0x23   : > { %759 = vmatpush3.msra.mxu0 %v188_v13  ;;  %862 = vmatpush3.msra.mxu1 %v415_v17 }
  0x24   : > { %761 = vmatmul.mubr.msk.f32.vlgmr.msra.gmra.mxu0 %vm196_vm0, %v173_v15  ;;  %784 = vmatprep.subr.mxu0 %v421_v3 }
  0x25   : > { %763 = vmatprep.mubr.msk.f32.mxu0 %vm196_vm0, %v174_v16  ;;  %785 = vmatpush3.msra.mxu0 %v421_v3 }
  0x26   : > { %786 = vmatprep.subr.mxu0 %v420_v5  ;;  %847 = vmatprep.subr.mxu1 %v414_v20 }
  0x27   : > { %787 = vmatpush3.msra.mxu0 %v420_v5  ;;  %863 = vmatpush3.msra.mxu1 %v414_v20 }
  0x28   : > { %764 = vmatmul.mubr.msk.f32.gmra.mxu0 %vm196_vm0, %v175_v18  ;;  %788 = vmatprep.subr.mxu0 %v419_v7 }
  0x29   : > { %766 = vmatprep.mubr.msk.f32.mxu0 %vm196_vm0, %v176_v19  ;;  %789 = vmatpush3.msra.mxu0 %v419_v7 }
  0x2a   : > { %790 = vmatprep.subr.mxu0 %v418_v10  ;;  %848 = vmatprep.subr.mxu1 %v413_v23 }
  0x2b   : > { %791 = vmatpush3.msra.mxu0 %v418_v10  ;;  %864 = vmatpush3.msra.mxu1 %v413_v23 }
  0x2c   : > { %767 = vmatmul.mubr.msk.f32.gmra.mxu0 %vm196_vm0, %v177_v21  ;;  %792 = vmatprep.subr.mxu0 %v417_v12 }
  0x2d   : > { %769 = vmatprep.mubr.msk.f32.mxu0 %vm196_vm0, %v178_v22  ;;  %793 = vmatpush3.msra.mxu0 %v417_v12 }
  0x2e   : > { %794 = vmatprep.subr.mxu0 %v416_v14  ;;  %849 = vmatprep.subr.mxu1 %v412_v26 }
  0x2f   : > { %795 = vmatpush3.msra.mxu0 %v416_v14  ;;  %865 = vmatpush3.msra.mxu1 %v412_v26 }
  0x30   : > { %770 = vmatmul.mubr.msk.f32.gmra.mxu0 %vm196_vm0, %v179_v24  ;;  %796 = vmatprep.subr.mxu0 %v415_v17 }
  0x31   : > { %772 = vmatprep.mubr.msk.f32.mxu0 %vm196_vm0, %v180_v25  ;;  %797 = vmatpush3.msra.mxu0 %v415_v17 }
  0x32   : > { %798 = vmatprep.subr.mxu0 %v414_v20  ;;  %850 = vmatprep.subr.mxu1 %v411_v29 }
  0x33   : > { %799 = vmatpush3.msra.mxu0 %v414_v20  ;;  %866 = vmatpush3.msra.mxu1 %v411_v29 }
  0x34   : > { %773 = vmatmul.mubr.msk.f32.gmra.mxu0 %vm196_vm0, %v181_v27  ;;  %800 = vmatprep.subr.mxu0 %v413_v23 }
  0x35   : > { %775 = vmatprep.mubr.msk.f32.mxu0 %vm196_vm0, %v182_v28  ;;  %801 = vmatpush3.msra.mxu0 %v413_v23 }
  0x36   : > { %802 = vmatprep.subr.mxu0 %v412_v26  ;;  %851 = vmatprep.subr.mxu1 %v410_v32 }
  0x37   : > { %803 = vmatpush3.msra.mxu0 %v412_v26  ;;  %867 = vmatpush3.msra.mxu1 %v410_v32 }
  0x38   : > { %776 = vmatmul.mubr.msk.f32.gmra.mxu0 %vm196_vm0, %v183_v30  ;;  %804 = vmatprep.subr.mxu0 %v411_v29 }
  0x39   : > { %778 = vmatprep.mubr.msk.f32.mxu0 %vm196_vm0, %v184_v31  ;;  %805 = vmatpush3.msra.mxu0 %v411_v29 }
  0x3a   : > { %806 = vmatprep.subr.mxu0 %v410_v32  ;;  %852 = vmatprep.subr.mxu1 %v409_v34 }
  0x3b   : > { %807 = vmatpush3.msra.mxu0 %v410_v32  ;;  %868 = vmatpush3.msra.mxu1 %v409_v34 }
  0x3c   : > { %779 = vmatmul.mubr.msk.f32.gmra.mxu0 %vm196_vm0, %v185_v33  ;;  %808 = vmatprep.subr.mxu0 %v409_v34 }
  0x3d   : > { %781 = vmatprep.mubr.msk.f32.mxu0 %vm196_vm0, %v186_v35  ;;  %809 = vmatpush3.msra.mxu0 %v409_v34 }
  0x3e   : > { %810 = vmatprep.subr.mxu0 %v408_v37  ;;  %853 = vmatprep.subr.mxu1 %v408_v37 }
  0x3f   : > { %811 = vmatpush3.msra.mxu0 %v408_v37  ;;  %869 = vmatpush3.msra.mxu1 %v408_v37 }
  0x40   : > { %782 = vmatmul.mubr.msk.f32.gmra.mxu0 %vm196_vm0, %v187_v36  ;;  %812 = vmatprep.subr.mxu0 %v407_v38 }
  0x41   : > { %854 = vmatprep.subr.mxu1 %v407_v38  ;;  %813 = vmatpush3.msra.mxu0 %v407_v38 }
  0x42   : > { %870 = vmatpush3.msra.mxu1 %v407_v38  ;;  %814 = vmatprep.subr.mxu0 %v406_v39 }
  0x43   : > { %855 = vmatprep.subr.mxu1 %v406_v39  ;;  %815 = vmatpush3.msra.mxu0 %v406_v39 }
  0x44   : > { %871 = vmatpush3.msra.mxu1 %v406_v39 }
  0xe4   : > { %v762_v40 = vpop.f32.mrf.mxu0 }
  0xe5   : > { %v391_v43 = vmax.f32 %v762_v40, 0.0 }
  0xe6   : > { %v311_v41 = vpop.f32.mrf.mxu0 }
  0xe7   : > { %v390_v42 = vmax.f32 %v311_v41, 0.0 }
  0xe8   : > { %v765_v44 = vpop.f32.mrf.mxu0 }
  0xe9   : > { %816 = vmatprep.mubr.f32.mxu0 %v390_v42  ;;  %v393_v47 = vmax.f32 %v765_v44, 0.0 }
  0xea   : > { %v321_v45 = vpop.f32.mrf.mxu0  ;;  %817 = vmatmul.mubr.f32.vlgmr.msra.gmra.mxu0 %v391_v43 }
  0xeb   : > { %v392_v46 = vmax.f32 %v321_v45, 0.0 }
  0xec   : > { %v768_v48 = vpop.f32.mrf.mxu0 }
  0xed   : > { %819 = vmatprep.mubr.f32.mxu0 %v392_v46  ;;  %v395_v51 = vmax.f32 %v768_v48, 0.0 }
  0xee   : > { %v331_v49 = vpop.f32.mrf.mxu0  ;;  %820 = vmatmul.mubr.f32.gmra.mxu0 %v393_v47 }
  0xef   : > { %v394_v50 = vmax.f32 %v331_v49, 0.0 }
  0xf0   : > { %v771_v52 = vpop.f32.mrf.mxu0 }
  0xf1   : > { %822 = vmatprep.mubr.f32.mxu1 %v394_v50  ;;  %v397_v55 = vmax.f32 %v771_v52, 0.0 }
  0xf2   : > { %v341_v53 = vpop.f32.mrf.mxu0  ;;  %823 = vmatmul.mubr.f32.vlgmr.msra.gmra.mxu1 %v395_v51 }
  0xf3   : > { %v396_v54 = vmax.f32 %v341_v53, 0.0 }
  0xf4   : > { %v774_v56 = vpop.f32.mrf.mxu0 }
  0xf5   : > { %825 = vmatprep.mubr.f32.mxu1 %v396_v54  ;;  %v399_v59 = vmax.f32 %v774_v56, 0.0 }
  0xf6   : > { %v351_v57 = vpop.f32.mrf.mxu0  ;;  %826 = vmatmul.mubr.f32.gmra.mxu1 %v397_v55 }
  0xf7   : > { %v398_v58 = vmax.f32 %v351_v57, 0.0 }
  0xf8   : > { %v777_v60 = vpop.f32.mrf.mxu0 }
  0xf9   : > { %828 = vmatprep.mubr.f32.mxu1 %v398_v58  ;;  %v401_v63 = vmax.f32 %v777_v60, 0.0 }
  0xfa   : > { %v361_v61 = vpop.f32.mrf.mxu0  ;;  %829 = vmatmul.mubr.f32.gmra.mxu1 %v399_v59 }
  0xfb   : > { %v400_v62 = vmax.f32 %v361_v61, 0.0 }
  0xfc   : > { %v780_v0 = vpop.f32.mrf.mxu0 }
  0xfd   : > { %831 = vmatprep.mubr.f32.mxu1 %v400_v62  ;;  %v403_v3 = vmax.f32 %v780_v0, 0.0 }
  0xfe   : > { %v371_v1 = vpop.f32.mrf.mxu0  ;;  %832 = vmatmul.mubr.f32.gmra.mxu1 %v401_v63 }
  0xff   : > { %v402_v2 = vmax.f32 %v371_v1, 0.0 }
 0x100   : > { %v783_v4 = vpop.f32.mrf.mxu0 }
 0x101   : > { %834 = vmatprep.mubr.f32.mxu1 %v402_v2  ;;  %v405_v7 = vmax.f32 %v783_v4, 0.0 }
 0x102   : > { %v381_v5 = vpop.f32.mrf.mxu0  ;;  %835 = vmatmul.mubr.f32.gmra.mxu1 %v403_v3 }
 0x103   : > { %v404_v6 = vmax.f32 %v381_v5, 0.0 }
 0x105   : > { %837 = vmatprep.mubr.f32.mxu1 %v404_v6 }
 0x106   : > { %838 = vmatmul.mubr.f32.gmra.mxu1 %v405_v7 }
 0x1aa   : > { %v818_v8 = vpop.f32.mrf.mxu0 }
 0x1ab   : > { %568 = vst [vmem:[%s1159_s26 + $0x8] sm:$0xff] %v818_v8 }
 0x1ac   : > { %v488_v9 = vpop.f32.mrf.mxu0 }
 0x1ad   : > { %567 = vst [vmem:[%s1159_s26] sm:$0xff] %v488_v9 }
 0x1ae   : > { %v821_v10 = vpop.f32.mrf.mxu0 }
 0x1af   : > { %570 = vst [vmem:[%s1159_s26 + $0x18] sm:$0xff] %v821_v10 }
 0x1b0   : > { %v498_v11 = vpop.f32.mrf.mxu0 }
 0x1b1   : > { %569 = vst [vmem:[%s1159_s26 + $0x10] sm:$0xff] %v498_v11 }
 0x1b2   : > { %v824_v12 = vpop.f32.mrf.mxu1 }
 0x1b3   : > { %572 = vst [vmem:[%s1159_s26 + $0x28] sm:$0xff] %v824_v12 }
 0x1b4   : > { %v508_v13 = vpop.f32.mrf.mxu1 }
 0x1b5   : > { %571 = vst [vmem:[%s1159_s26 + $0x20] sm:$0xff] %v508_v13 }
 0x1b6   : > { %v827_v14 = vpop.f32.mrf.mxu1 }
 0x1b7   : > { %574 = vst [vmem:[%s1159_s26 + $0x38] sm:$0xff] %v827_v14 }
 0x1b8   : > { %v518_v15 = vpop.f32.mrf.mxu1 }
 0x1b9   : > { %573 = vst [vmem:[%s1159_s26 + $0x30] sm:$0xff] %v518_v15 }
 0x1ba   : > { %v830_v16 = vpop.f32.mrf.mxu1 }
 0x1bb   : > { %576 = vst [vmem:[%s1159_s26 + $0x48] sm:$0xff] %v830_v16 }
 0x1bc   : > { %v528_v17 = vpop.f32.mrf.mxu1 }
 0x1bd   : > { %575 = vst [vmem:[%s1159_s26 + $0x40] sm:$0xff] %v528_v17 }
 0x1be   : > { %v833_v18 = vpop.f32.mrf.mxu1 }
 0x1bf   : > { %578 = vst [vmem:[%s1159_s26 + $0x58] sm:$0xff] %v833_v18 }
 0x1c0   : > { %v538_v19 = vpop.f32.mrf.mxu1 }
 0x1c1   : > { %577 = vst [vmem:[%s1159_s26 + $0x50] sm:$0xff] %v538_v19 }
 0x1c2   : > { %v836_v20 = vpop.f32.mrf.mxu1 }
 0x1c3   : > { %580 = vst [vmem:[%s1159_s26 + $0x68] sm:$0xff] %v836_v20 }
 0x1c4   : > { %v548_v21 = vpop.f32.mrf.mxu1 }
 0x1c5   : > { %579 = vst [vmem:[%s1159_s26 + $0x60] sm:$0xff] %v548_v21 }
 0x1c6   : > { %v839_v22 = vpop.f32.mrf.mxu1 }
 0x1c7   : > { %582 = vst [vmem:[%s1159_s26 + $0x78] sm:$0xff] %v839_v22 }
 0x1c8   : > { %v558_v23 = vpop.f32.mrf.mxu1 }
 0x1c9   : > { %581 = vst [vmem:[%s1159_s26 + $0x70] sm:$0xff] %v558_v23 }
 0x1ca   : > { %926 = shalt.err (!%p923_p3)
}
 0x1cb   : > { %s927_s9 = scalar_lea.hbm %s1180_s4, 2048  ;;  %s931_s17 = scalar_lea.hbm %s1231_s3, 8192 }
 0x1cc   : > { %p928_p4 = scmp.ne.s32.totalorder %s1180_s4, %s927_s9  ;;  %p932_p9 = scmp.lt.s32.totalorder %s1180_s4, %s1231_s3 }
 0x1cd   : > { %p933_p10 = scmp.lt.s32.totalorder %s931_s17, %s927_s9 }
 0x1ce   : > { %p929_p7 = pnand %p928_p4, %p1036_p5 }
 0x1cf   : > { %p934_p11 = por %p933_p10, %p932_p9 }
 0x1d0   : > { %p930_p8 = pneg %p929_p7 }
 0x1d2   : > { %p935_p12 = pnand %p934_p11, %p930_p8 }
 0x1d4   : > { %938 = shalt.err (!%p935_p12)
}
 0x1d5   : > { %s976_s20 = smov 128   ;;  %s977_s25 = smov 8  }
 0x1d6   : > { %872 = dma.vmem_to_hbm [thread:$0]  (%p1036_p5), %s1182_s28, 2048, %s1180_s4, %s1188_s5, %s976_s20, %s976_s20, %s977_s25  }
 0x1d7 PF: > { %p878_p13 = scmp.ge.s32.totalorder %s973_s15, 2  ;;  %s612_s26 = sand.u32 1, %s961_s12  }
 0x1d8   : > { %s613_s27 = scalar_lea.sflag [#allocation3], %s612_s26 }
 0x1d9   : > { %p875_p0 = pnand %p878_p13, %p1040_p6 }
 0x1db   : > { %p876_p1 = pneg %p875_p0 }
 0x1dd   : > { %956 = dma.done.wait (%p876_p1), %s613_s27, 2048  }
 0x1de   : > { %958 = vsyncadd (%p876_p1), %s613_s27, 4294965248  ;;  %p13_p2 = scmp.ge.s32.totalorder %s1023_s18, 6   ;;  %s1234_s12 = smov %s965_s13 }
 0x1df   : > { %s1235_s13 = smov %s969_s14  ;;  %s1236_s14 = smov %s1034_s21 }
 0x1e0   : > { %s1237_s15 = smov %s1023_s18  ;;  %15 = sbr.rel (!%p13_p2) target bundleno = 3 (0x3), region = 67 }
 0x1e5   :  { %618 = vsyncpa [#allocation3], 1 }
 0x1e6   :  { %620 = vsyncpa [#allocation3 + $0x1], 1 }

</bundles_post_ra>
